<compile_context>
chip_gen: v7x
topology: tpu7x:2x2x1
jax: 0.10.0
libtpu: 0.0.40
codegen_flags: <defaults>
</compile_context>

<pallas_src>
import functools
import math

import jax
import jax.numpy as jnp
from jax.experimental import pallas as pl
from jax.experimental.pallas import tpu as pltpu


_EPS = 1e-6
_LOG_EPS = math.log(_EPS)            # lower clamp of log(a) / log(1 - a)
_LOG_1M_EPS = math.log(1.0 - _EPS)   # upper clamp of log(a) / log(1 - a)


def _ce_kernel(inp_ref, tar_ref, out_ref, *, inv_s):
    # inp_ref / tar_ref: (TR, TS) VMEM tiles (rows = flattened (n, c)).
    # out_ref: (TR, 1) block, resident across the spatial (last) grid axis.
    s = pl.program_id(1)

    @pl.when(s == 0)
    def _():
        out_ref[...] = jnp.zeros_like(out_ref)

    x = inp_ref[...].astype(jnp.float32)
    y = tar_ref[...].astype(jnp.float32)

    # Stable log-sigmoid, sharing one exp + one log1p (EUP-bound work):
    #   lp            = log(1 + exp(-|x|))
    #   log(sig(x))   = min(x, 0) - lp
    #   log(1-sig(x)) = log(sig(-x)) = -max(x, 0) - lp
    # Clipping the log-probs to [log(eps), log(1-eps)] reproduces the
    # reference's a.clamp(1e-6, 1 - 1e-6) exactly (log is monotone).
    lp = jnp.log1p(jnp.exp(-jnp.abs(x)))
    log_a = jnp.clip(jnp.minimum(x, 0.0) - lp, _LOG_EPS, _LOG_1M_EPS)
    log_1ma = jnp.clip(-jnp.maximum(x, 0.0) - lp, _LOG_EPS, _LOG_1M_EPS)

    l = -(y * log_a + (1.0 - y) * log_1ma)                    # (TR, TS)
    out_ref[...] += jnp.sum(l, axis=-1, keepdims=True)        # partial row sums

    @pl.when(s == pl.num_programs(1) - 1)
    def _():
        out_ref[...] *= inv_s                                  # sum -> mean over H*W


def _pick_tiles(r, s, elem_bytes, block_budget_bytes=2 * 1024 * 1024):
    """Pick (TR, TS) so each input block is at most ~block_budget_bytes.

    TR is a multiple of 8 (or the full row count) and divides R; TS is a
    multiple of 128 (or the full spatial size) and divides S — satisfying the
    (8, 128) block-shape constraint while staying lane/sublane aligned.
    """
    # Spatial tile: keep full S if it fits (with at least an 8-row block);
    # otherwise halve while staying a multiple of 128 and a divisor of S.
    ts = s
    if s % 128 == 0:
        while 8 * ts * elem_bytes > block_budget_bytes and ts % 256 == 0:
            ts //= 2
    # Row tile: as many rows as fit the budget; prefer full R, else the
    # largest sublane-aligned (multiple of 8) divisor of R.
    per_row = ts * elem_bytes
    cap = max(1, block_budget_bytes // per_row)
    if r <= cap:
        return r, ts
    aligned = [d for d in range(8, r + 1, 8) if r % d == 0 and d <= cap]
    if aligned:
        return max(aligned), ts
    # No aligned divisor under budget: fall back to the full row extent
    # (correct layout-wise; may exceed the soft budget).
    return r, ts


def ce_unflat_pallas(inputs, targets):
    """Pallas equivalent of ce_unflat: per-(n, c) mean BCE, shape (N, C), f32."""
    N, C, H, W = inputs.shape
    S = H * W
    R = N * C
    x = inputs.reshape(R, S)   # free for contiguous NCHW
    y = targets.reshape(R, S)

    TR, TS = _pick_tiles(R, S, x.dtype.itemsize)
    grid = (R // TR, S // TS)

    kernel = functools.partial(_ce_kernel, inv_s=1.0 / S)

    out = pl.pallas_call(
        kernel,
        out_shape=jax.ShapeDtypeStruct((R, 1), jnp.float32),
        grid=grid,
        in_specs=[
            pl.BlockSpec((TR, TS), lambda i, s: (i, s)),
            pl.BlockSpec((TR, TS), lambda i, s: (i, s)),
        ],
        # Per-step output block along the row axis; resident across the
        # spatial (reduction) axis only.
        out_specs=pl.BlockSpec((TR, 1), lambda i, s: (i, 0)),
        compiler_params=pltpu.CompilerParams(
            dimension_semantics=("parallel", "arbitrary"),
        ),
    )(x, y)
    return out.reshape(N, C)


def ce_forward(inputs, targets, w=100.0, it=0):
    """Forward pass of the CE module (it == 0 path)."""
    if it != 0:
        # TODO(synk): it != 0 path references self.dw which is never defined
        # in the PyTorch module; only the it == 0 path is reproducible.
        raise NotImplementedError(
            "it != 0 path uses undefined self.dw in the reference module")
    # Only channel 1 is consumed when it == 0 (l[:, 1].mean(); l[:, 0] is
    # dead), so slice before the kernel: cuts HBM traffic and EUP work by Cx.
    l1 = ce_unflat_pallas(inputs[:, 1:2], targets[:, 1:2])   # (N, 1)
    ar = jnp.mean(l1)
    return w * ar


if __name__ == "__main__":
    key = jax.random.PRNGKey(0)
    k1, k2 = jax.random.split(key)

    N, C, H, W = 2, 4, 16, 16
    inputs = jax.random.normal(k1, (N, C, H, W), dtype=jnp.float32)
    targets = jax.random.bernoulli(k2, 0.5, (N, C, H, W)).astype(jnp.float32)

    # Full per-(n, c) matrix (ce_unflat equivalent).
    l = ce_unflat_pallas(inputs, targets)
    l = jax.block_until_ready(l)

    # Forward pass of the module (it == 0).
    out = ce_forward(inputs, targets, w=100.0, it=0)
    out = jax.block_until_ready(out)

    # Pure-JAX reference (same math as the PyTorch module).
    a_ref = jnp.clip(jax.nn.sigmoid(inputs), 1e-06, 1.0 - 1e-06)
    l_ref = -(targets * jnp.log(a_ref) + (1.0 - targets) * jnp.log(1.0 - a_ref))
    l_ref = l_ref.mean(axis=2).mean(axis=2)
    ref_out = 100.0 * l_ref[:, 1].mean()

    assert jnp.allclose(l, l_ref, rtol=1e-5, atol=1e-5), (l, l_ref)
    assert jnp.allclose(out, ref_out, rtol=1e-5, atol=1e-4), (out, ref_out)
    print("KERNEL_OK")
</pallas_src>

<mosaic_0001>
module attributes {stable_mosaic.version = 11 : i64} {
  func.func @_ce_kernel(%arg0: i32, %arg1: i32, %arg2: memref<8x256xf32, #tpu.memory_space<vmem>>, %arg3: memref<8x256xf32, #tpu.memory_space<vmem>>, %arg4: memref<8x1xf32, #tpu.memory_space<vmem>>) attributes {dimension_semantics = [#tpu.dimension_semantics<parallel>, #tpu.dimension_semantics<arbitrary>], iteration_bounds = array<i64: 1, 1>, scalar_prefetch = 0 : i64, scratch_operands = 0 : i64, tpu.core_type = #tpu.core_type<tc>, window_params = [{transform_indices = @transform_0, window_bounds = array<i64: 8, 256>}, {transform_indices = @transform_1, window_bounds = array<i64: 8, 256>}, {transform_indices = @transform_2, window_bounds = array<i64: 8, 1>}]} {
    %c0_i32 = arith.constant 0 : i32
    %0 = arith.cmpi eq, %arg1, %c0_i32 : i32
    %1 = arith.extui %0 : i1 to i32
    %c0_i32_0 = arith.constant 0 : i32
    %2 = arith.cmpi ne, %1, %c0_i32_0 : i32
    scf.if %2 {
      %cst_20 = arith.constant 0.000000e+00 : f32
      %41 = vector.broadcast %cst_20 : f32 to vector<8x1xf32>
      %c0_21 = arith.constant 0 : index
      %c0_22 = arith.constant 0 : index
      %42 = vector.load %arg4[%c0_21, %c0_22] : memref<8x1xf32, #tpu.memory_space<vmem>>, vector<8x1xf32>
      tpu.vector_store %arg4[%c0_21, %c0_22], %41 {strides = array<i32>} : memref<8x1xf32, #tpu.memory_space<vmem>>, vector<8x1xf32>,
    } else {
    }
    %c0 = arith.constant 0 : index
    %c0_1 = arith.constant 0 : index
    %3 = vector.load %arg2[%c0, %c0_1] : memref<8x256xf32, #tpu.memory_space<vmem>>, vector<8x256xf32>
    %c0_2 = arith.constant 0 : index
    %c0_3 = arith.constant 0 : index
    %4 = vector.load %arg3[%c0_2, %c0_3] : memref<8x256xf32, #tpu.memory_space<vmem>>, vector<8x256xf32>
    %5 = math.absf %3 : vector<8x256xf32>
    %cst = arith.constant 0.000000e+00 : f32
    %6 = vector.broadcast %cst : f32 to vector<8x256xf32>
    %7 = arith.subf %6, %5 : vector<8x256xf32>
    %8 = math.exp %7 : vector<8x256xf32>
    %9 = math.log1p %8 : vector<8x256xf32>
    %cst_4 = arith.constant 0.000000e+00 : f32
    %10 = vector.broadcast %cst_4 : f32 to vector<8x256xf32>
    %11 = arith.minimumf %3, %10 : vector<8x256xf32>
    %12 = arith.subf %11, %9 : vector<8x256xf32>
    %cst_5 = arith.constant -13.8155107 : f32
    %cst_6 = arith.constant -1.00000045E-6 : f32
    %13 = vector.broadcast %cst_5 : f32 to vector<8x256xf32>
    %14 = arith.maximumf %13, %12 : vector<8x256xf32>
    %15 = vector.broadcast %cst_6 : f32 to vector<8x256xf32>
    %16 = arith.minimumf %15, %14 : vector<8x256xf32>
    %cst_7 = arith.constant 0.000000e+00 : f32
    %17 = vector.broadcast %cst_7 : f32 to vector<8x256xf32>
    %18 = arith.maximumf %3, %17 : vector<8x256xf32>
    %cst_8 = arith.constant 0.000000e+00 : f32
    %19 = vector.broadcast %cst_8 : f32 to vector<8x256xf32>
    %20 = arith.subf %19, %18 : vector<8x256xf32>
    %21 = arith.subf %20, %9 : vector<8x256xf32>
    %cst_9 = arith.constant -13.8155107 : f32
    %cst_10 = arith.constant -1.00000045E-6 : f32
    %22 = vector.broadcast %cst_9 : f32 to vector<8x256xf32>
    %23 = arith.maximumf %22, %21 : vector<8x256xf32>
    %24 = vector.broadcast %cst_10 : f32 to vector<8x256xf32>
    %25 = arith.minimumf %24, %23 : vector<8x256xf32>
    %26 = arith.mulf %4, %16 : vector<8x256xf32>
    %cst_11 = arith.constant 1.000000e+00 : f32
    %27 = vector.broadcast %cst_11 : f32 to vector<8x256xf32>
    %28 = arith.subf %27, %4 : vector<8x256xf32>
    %29 = arith.mulf %28, %25 : vector<8x256xf32>
    %30 = arith.addf %26, %29 : vector<8x256xf32>
    %cst_12 = arith.constant 0.000000e+00 : f32
    %31 = vector.broadcast %cst_12 : f32 to vector<8x256xf32>
    %32 = arith.subf %31, %30 : vector<8x256xf32>
    %c0_13 = arith.constant 0 : index
    %c0_14 = arith.constant 0 : index
    %33 = vector.load %arg4[%c0_13, %c0_14] : memref<8x1xf32, #tpu.memory_space<vmem>>, vector<8x1xf32>
    %cst_15 = arith.constant dense<0.000000e+00> : vector<8xf32>
    %34 = vector.multi_reduction <add>, %32, %cst_15 [1] : vector<8x256xf32> to vector<8xf32>
    %35 = vector.shape_cast %34 : vector<8xf32> to vector<8x1xf32>
    %36 = arith.addf %33, %35 : vector<8x1xf32>
    %c0_16 = arith.constant 0 : index
    %c0_17 = arith.constant 0 : index
    %37 = vector.load %arg4[%c0_16, %c0_17] : memref<8x1xf32, #tpu.memory_space<vmem>>, vector<8x1xf32>
    tpu.vector_store %arg4[%c0_16, %c0_17], %36 {strides = array<i32>} : memref<8x1xf32, #tpu.memory_space<vmem>>, vector<8x1xf32>,
    %c0_i32_18 = arith.constant 0 : i32
    %38 = arith.cmpi eq, %arg1, %c0_i32_18 : i32
    %39 = arith.extui %38 : i1 to i32
    %c0_i32_19 = arith.constant 0 : i32
    %40 = arith.cmpi ne, %39, %c0_i32_19 : i32
    scf.if %40 {
      %c0_20 = arith.constant 0 : index
      %c0_21 = arith.constant 0 : index
      %41 = vector.load %arg4[%c0_20, %c0_21] : memref<8x1xf32, #tpu.memory_space<vmem>>, vector<8x1xf32>
      %cst_22 = arith.constant 3.906250e-03 : f32
      %42 = vector.broadcast %cst_22 : f32 to vector<8x1xf32>
      %43 = arith.mulf %41, %42 : vector<8x1xf32>
      %c0_23 = arith.constant 0 : index
      %c0_24 = arith.constant 0 : index
      %44 = vector.load %arg4[%c0_23, %c0_24] : memref<8x1xf32, #tpu.memory_space<vmem>>, vector<8x1xf32>
      tpu.vector_store %arg4[%c0_23, %c0_24], %43 {strides = array<i32>} : memref<8x1xf32, #tpu.memory_space<vmem>>, vector<8x1xf32>,
    } else {
    }
    return
  }
  func.func @transform_0(%arg0: i32, %arg1: i32) -> (i32, i32) {
    %c0_i32 = arith.constant 0 : i32
    return %arg0, %arg1 : i32, i32
  }
  func.func @transform_1(%arg0: i32, %arg1: i32) -> (i32, i32) {
    %c0_i32 = arith.constant 0 : i32
    return %arg0, %arg1 : i32, i32
  }
  func.func @transform_2(%arg0: i32, %arg1: i32) -> (i32, i32) {
    %c0_i32 = arith.constant 0 : i32
    %c0_i32_0 = arith.constant 0 : i32
    return %arg0, %c0_i32 : i32, i32
  }
}

</mosaic_0001>

<bundles_post_ra>
// kernel: tpu_custom_call.1
= control target key start
LH: loop header
LB: loop body
LE: loop exit
PB: predicated region body
PF: predicated region fallthrough
CT: control target
= control target key end

     0   :  { %7 = vsyncpa [#allocation3], 0  ;;  %s237_s0 = inlined_call_operand.hbm [shape: f32[8,256], index: 0, kind: input, shape index: {}]   ;;  %s238_s1 = inlined_call_operand.hbm [shape: f32[8,256], index: 1, kind: input, shape index: {}]   ;;  %s239_s2 = inlined_call_operand.vmem [shape: f32[8,1], index: 2, kind: output, shape index: {}]  }
   0x1   :  { %8 = vsyncpa [#allocation5], 0  ;;  %s177_s9 = smov [#allocation2]   ;;  %s178_s11 = smov [#allocation4]  }
   0x2   :  { %s15_s10 = sshll.u32 %s177_s9, 4  ;;  %s25_s12 = sshll.u32 %s178_s11, 4  ;;  %s16_s10 = int_to_ptr.vmem [resolvable:$true] %s15_s10  ;;  %s26_s12 = int_to_ptr.vmem [resolvable:$true] %s25_s12 }
   0x3   :  { %s129_s15 = scalar_lea.hbm %s237_s0, 256 }
   0x4   :  { %p130_p0 = scmp.ne.s32.totalorder %s237_s0, %s129_s15  ;;  %p133_p1 = scmp.lt.u32.totalorder %s129_s15, %s237_s0 }
   0x6   :  { %p135_p2 = pnand %p133_p1, %p130_p0 }
   0x8   :  { %138 = shalt.err (!%p135_p2)
}
   0x9   :  { %s139_s20 = scalar_lea.vmem %s16_s10, 256  ;;  %p144_p4 = scmp.lt.s32.totalorder %s16_s10, %s16_s10 }
   0xa   :  { %p140_p3 = scmp.ne.s32.totalorder %s16_s10, %s139_s20  ;;  %p145_p5 = scmp.lt.s32.totalorder %s139_s20, %s139_s20 }
   0xc   :  { %p146_p6 = por %p145_p5, %p144_p4 }
   0xe   :  { %p147_p7 = pnand %p146_p6, %p140_p3 }
  0x10   :  { %150 = shalt.err (!%p147_p7)
}
  0x11   :  { %18 = dma.hbm_to_vmem [thread:$0]  %s237_s0, 256, %s16_s10, [#allocation3]  }
  0x12   :  { %s151_s25 = scalar_lea.hbm %s238_s1, 256 }
  0x13   :  { %p152_p8 = scmp.ne.s32.totalorder %s238_s1, %s151_s25  ;;  %p155_p9 = scmp.lt.u32.totalorder %s151_s25, %s238_s1 }
  0x15   :  { %p157_p10 = pnand %p155_p9, %p152_p8 }
  0x17   :  { %160 = shalt.err (!%p157_p10)
}
  0x18   :  { %s161_s30 = scalar_lea.vmem %s26_s12, 256  ;;  %p166_p12 = scmp.lt.s32.totalorder %s26_s12, %s26_s12 }
  0x19   :  { %p162_p11 = scmp.ne.s32.totalorder %s26_s12, %s161_s30  ;;  %p167_p13 = scmp.lt.s32.totalorder %s161_s30, %s161_s30 }
  0x1b   :  { %p168_p0 = por %p167_p13, %p166_p12 }
  0x1d   :  { %p169_p1 = pnand %p168_p0, %p162_p11 }
  0x1f   :  { %172 = shalt.err (!%p169_p1)
}
  0x20   :  { %28 = dma.hbm_to_vmem [thread:$0]  %s238_s1, 256, %s26_s12, [#allocation5]  }
  0x21   :  { %173 = dma.done.wait [#allocation3], 256  }
  0x22   :  { %174 = vsyncadd [#allocation3], 4294967040 }
  0x23   :  { %175 = dma.done.wait [#allocation5], 256  }
  0x24   :  { %176 = vsyncadd [#allocation5], 4294967040  ;;  %vm39_vm0 = vcmask 7168   ;;  %v179_v0 = vmov 0.0   ;;  %v41_v1 = vld [vmem:[#allocation2] sm:$0xff]  ;;  %v42_v2 = vld [vmem:[#allocation2 + $0x8] sm:$0xff] }
  0x25   :  { %40 = vst.msk [vmem:[%s239_s2] sm:$0xff] %vm39_vm0, %v179_v0  ;;  %v45_v3 = vand.u32 2147483647, %v41_v1  ;;  %v46_v4 = vand.u32 2147483647, %v42_v2  ;;  %v79_v18 = vmax.f32 %v41_v1, 0.0 }
  0x26   :  { %v80_v20 = vmax.f32 %v42_v2, 0.0  ;;  %v71_v24 = vmin.f32 %v41_v1, 0.0  ;;  %v72_v28 = vmin.f32 %v42_v2, 0.0  ;;  %v43_v31 = vld [vmem:[#allocation4] sm:$0xff]  ;;  %v44_v33 = vld [vmem:[#allocation4 + $0x8] sm:$0xff] }
  0x27   :  { %v47_v5 = vsub.f32 0.0, %v45_v3  ;;  %v48_v6 = vsub.f32 0.0, %v46_v4  ;;  %v81_v25 = vsub.f32 0.0, %v79_v18  ;;  %v91_v41 = vsub.f32 1.0, %v43_v31 }
  0x28   :  { %v82_v29 = vsub.f32 0.0, %v80_v20  ;;  %v92_v44 = vsub.f32 1.0, %v44_v33 }
  0x29   :  { %v49_v7 = vmul.f32 1.442695, %v47_v5  ;;  %v51_v8 = vmul.f32 1.442695, %v48_v6 }
  0x2b   :  { %121 = vpow2.f32 %v49_v7 }
  0x2c   :  { %123 = vpow2.f32 %v51_v8  ;;  %v99_v58 = vld [vmem:[%s239_s2] sm:$0xff] }
  0x35   :  { %v122_v9 = vpop.eup %121 }
  0x36   :  { %v124_v10 = vpop.eup %123  ;;  %v53_v11 = vadd.f32 1.0, %v122_v9  ;;  %v56_v13 = vmul.f32 -0.5, %v122_v9  ;;  %v59_v16 = vand.u32 2147483647, %v122_v9 }
  0x37   :  { %v62_v12 = vadd.f32 1.0, %v124_v10  ;;  %v65_v14 = vmul.f32 -0.5, %v124_v10  ;;  %v68_v19 = vand.u32 2147483647, %v124_v10 }
  0x38   :  { %125 = vlog2.f32 %v53_v11  ;;  %v57_v15 = vadd.f32 1.0, %v56_v13  ;;  %vm60_vm1 = vcmp.lt.f32.partialorder %v59_v16, 0.0004427343 }
  0x39   :  { %127 = vlog2.f32 %v62_v12  ;;  %v66_v17 = vadd.f32 1.0, %v65_v14  ;;  %vm69_vm2 = vcmp.lt.f32.partialorder %v68_v19, 0.0004427343 }
  0x3a   :  { %v58_v21 = vmul.f32 %v122_v9, %v57_v15 }
  0x3b   :  { %v67_v23 = vmul.f32 %v124_v10, %v66_v17 }
  0x42   :  { %v126_v22 = vpop.eup %125 }
  0x43   :  { %v128_v26 = vpop.eup %127  ;;  %v55_v27 = vmul.f32 0.6931472, %v126_v22 }
  0x44   :  { %v64_v30 = vmul.f32 0.6931472, %v128_v26 }
  0x45   :  { %v61_v32 = vsel %vm60_vm1, %v58_v21, %v55_v27 }
  0x46   :  { %v70_v34 = vsel %vm69_vm2, %v67_v23, %v64_v30  ;;  %v73_v35 = vsub.f32 %v71_v24, %v61_v32  ;;  %v83_v36 = vsub.f32 %v81_v25, %v61_v32 }
  0x47   :  { %v74_v37 = vsub.f32 %v72_v28, %v70_v34  ;;  %v84_v38 = vsub.f32 %v82_v29, %v70_v34 }
  0x48   :  { %v75_v39 = vmax.f32 %v73_v35, -13.815511  ;;  %v85_v40 = vmax.f32 %v83_v36, -13.815511 }
  0x49   :  { %v76_v42 = vmax.f32 %v74_v37, -13.815511  ;;  %v86_v43 = vmax.f32 %v84_v38, -13.815511 }
  0x4a   :  { %v77_v45 = vmin.f32 %v75_v39, -1.0000005e-06  ;;  %v87_v46 = vmin.f32 %v85_v40, -1.0000005e-06 }
  0x4b   :  { %v78_v47 = vmin.f32 %v76_v42, -1.0000005e-06  ;;  %v88_v48 = vmin.f32 %v86_v43, -1.0000005e-06 }
  0x4c   :  { %v89_v49 = vmul.f32 %v77_v45, %v43_v31  ;;  %v93_v50 = vmul.f32 %v91_v41, %v87_v46 }
  0x4d   :  { %v90_v51 = vmul.f32 %v78_v47, %v44_v33  ;;  %v94_v52 = vmul.f32 %v92_v44, %v88_v48 }
  0x4e   :  { %v95_v53 = vadd.f32 %v93_v50, %v89_v49 }
  0x4f   :  { %v96_v54 = vadd.f32 %v94_v52, %v90_v51 }
  0x50   :  { %v97_v55 = vsub.f32 0.0, %v95_v53 }
  0x51   :  { %v98_v56 = vsub.f32 0.0, %v96_v54 }
  0x53   :  { %v100_v57 = vadd.f32 %v98_v56, %v97_v55 }
  0x55   :  { %101 = vadd.xlane.f32.xlu0 %v100_v57 }
  0xe2   :  { %v102_v59 = vpop.xlane.xlu0 %101 }
  0xe3   :  { %v103_v60 = vadd.f32 %v102_v59, %v99_v58 }
  0xe5   :  { %105 = vst.msk [vmem:[%s239_s2] sm:$0xff] %vm39_vm0, %v103_v60 }
  0xec   :  { %v109_v61 = vld [vmem:[%s239_s2] sm:$0xff] }
  0xed   :  { %v110_v62 = vmul.f32 0.00390625, %v109_v61 }
  0xef   :  { %111 = vst.msk [vmem:[%s239_s2] sm:$0xff] %vm39_vm0, %v110_v62 }
  0xf0   :  { %116 = vsyncpa [#allocation3], 1 }
  0xf1   :  { %117 = vsyncpa [#allocation5], 1 }

</bundles_post_ra>
